<compile_context>
chip_gen: v7x
topology: tpu7x:2x2x1
jax: 0.10.0
libtpu: 0.0.40
codegen_flags: <defaults>
</compile_context>

<pallas_src>
import functools

import jax
import jax.numpy as jnp
from jax.experimental import pallas as pl
from jax.experimental.pallas import tpu as pltpu

LANES = 128          # lane width; padded hidden / action width
_NEG_INF = -1e30


def _round_up(x, m):
    return ((x + m - 1) // m) * m


def actor_kernel(x_ref, wp_ref, bp_ref, o_ref, *, obs_dim, r1, action_dim):
    """One batch tile of the Actor forward pass."""
    x = x_ref[...].astype(jnp.bfloat16)                     # [TB, obs_dim]

    # Packed, 128-lane-padded weights (bf16) and biases (f32).
    w1 = wp_ref[0:obs_dim, :]                               # [obs_dim, 128]
    w2 = wp_ref[r1:r1 + LANES, :]                           # [128, 128]
    w3 = wp_ref[r1 + LANES:r1 + 2 * LANES, :]               # [128, 128]
    b1 = bp_ref[0:1, :]                                     # [1, 128] f32
    b2 = bp_ref[1:2, :]
    b3 = bp_ref[2:3, :]

    # Layer 1: Linear + ReLU   (MXU bf16, f32 accumulate; elementwise in f32)
    h1 = jnp.dot(x, w1, preferred_element_type=jnp.float32) + b1
    h1 = jnp.maximum(h1, 0.0)

    # Layer 2: Linear + ReLU
    h2 = jnp.dot(h1.astype(jnp.bfloat16), w2,
                 preferred_element_type=jnp.float32) + b2
    h2 = jnp.maximum(h2, 0.0)

    # Output layer: Linear -> logits (padded to 128 lanes)
    logits = jnp.dot(h2.astype(jnp.bfloat16), w3,
                     preferred_element_type=jnp.float32) + b3

    # Mask padded action lanes so they don't dilute the softmax.
    lane = jax.lax.broadcasted_iota(jnp.int32, logits.shape, 1)
    logits = jnp.where(lane < action_dim, logits, _NEG_INF)

    # Numerically-stable softmax; reciprocal goes to the EUP slot.
    m = jnp.max(logits, axis=-1, keepdims=True)
    e = jnp.exp(logits - m)
    s = jnp.sum(e, axis=-1, keepdims=True)
    o_ref[...] = e * pl.reciprocal(s, approx=True)          # lane-dense store


def pack_actor_params(params, obs_dim, hidden, action_dim):
    """Pack (w1,b1,w2,b2,w3,b3) into one bf16 weight blob + one f32 bias blob.

    Weights are stored [in, out] and zero-padded to 128 output lanes; padded
    hidden rows/lanes are zero so they contribute nothing to the real lanes.
    Done once at init time (not per forward call).
    """
    w1, b1, w2, b2, w3, b3 = params
    r1 = _round_up(obs_dim, 16)   # bf16 sublane tile is 16 rows

    w1p = jnp.zeros((r1, LANES), jnp.float32).at[:obs_dim, :hidden].set(w1)
    w2p = jnp.zeros((LANES, LANES), jnp.float32).at[:hidden, :hidden].set(w2)
    w3p = jnp.zeros((LANES, LANES), jnp.float32).at[:hidden, :action_dim].set(w3)
    wp = jnp.concatenate([w1p, w2p, w3p], axis=0).astype(jnp.bfloat16)

    bp = jnp.zeros((8, LANES), jnp.float32)
    bp = bp.at[0, :hidden].set(b1[0])
    bp = bp.at[1, :hidden].set(b2[0])
    bp = bp.at[2, :action_dim].set(b3[0])
    return wp, bp, r1


def actor_forward(obs, wp, bp, *, obs_dim, action_dim, r1, tb=256):
    """obs: [B, obs_dim] float32 -> action probabilities [B, action_dim]."""
    B = obs.shape[0]
    TB = min(tb, _round_up(B, 8))            # tile rows (multiple of 8)
    Bp = _round_up(B, TB)
    if Bp != B:
        obs = jnp.pad(obs, ((0, Bp - B), (0, 0)))
    Rw = wp.shape[0]

    kernel = functools.partial(actor_kernel, obs_dim=obs_dim, r1=r1,
                               action_dim=action_dim)
    out = pl.pallas_call(
        kernel,
        out_shape=jax.ShapeDtypeStruct((Bp, LANES), jnp.float32),
        grid=(Bp // TB,),
        in_specs=[
            pl.BlockSpec((TB, obs_dim), lambda i: (i, 0)),   # pipelined obs tile
            pl.BlockSpec((Rw, LANES), lambda i: (0, 0)),     # VMEM-resident weights
            pl.BlockSpec((8, LANES), lambda i: (0, 0)),      # VMEM-resident biases
        ],
        out_specs=pl.BlockSpec((TB, LANES), lambda i: (i, 0)),
        compiler_params=pltpu.CompilerParams(
            dimension_semantics=("parallel",)),              # megacore shard (v7x)
    )(obs, wp, bp)
    return out[:B, :action_dim]


def init_linear(key, fan_in, fan_out):
    """PyTorch nn.Linear-style init: U(-1/sqrt(fan_in), +1/sqrt(fan_in)).

    Weight is returned as [in, out] (transposed vs. PyTorch storage)."""
    kw, kb = jax.random.split(key)
    bound = 1.0 / jnp.sqrt(jnp.asarray(fan_in, jnp.float32))
    w = jax.random.uniform(kw, (fan_in, fan_out), jnp.float32, -bound, bound)
    b = jax.random.uniform(kb, (1, fan_out), jnp.float32, -bound, bound)
    return w, b


def reference_forward(obs, params):
    w1, b1, w2, b2, w3, b3 = params
    h1 = jnp.maximum(obs @ w1 + b1, 0.0)
    h2 = jnp.maximum(h1 @ w2 + b2, 0.0)
    logits = h2 @ w3 + b3
    return jax.nn.softmax(logits, axis=-1)


if __name__ == "__main__":
    key = jax.random.PRNGKey(0)
    k_obs, k1, k2, k3 = jax.random.split(key, 4)

    # Small, module-consistent shapes.
    batch = 8
    obs_dim = 32
    hidden = 64        # fixed by the module definition
    action_dim = 8

    obs = jax.random.normal(k_obs, (batch, obs_dim), jnp.float32)

    w1, b1 = init_linear(k1, obs_dim, hidden)
    w2, b2 = init_linear(k2, hidden, hidden)
    w3, b3 = init_linear(k3, hidden, action_dim)
    params = (w1, b1, w2, b2, w3, b3)

    # Pack once (init-time), then run the kernel.
    wp, bp, r1 = pack_actor_params(params, obs_dim, hidden, action_dim)
    out = actor_forward(obs, wp, bp, obs_dim=obs_dim, action_dim=action_dim, r1=r1)
    out = jax.block_until_ready(out)

    # Sanity check against a pure-f32 JAX reference (bf16 matmuls + approx
    # reciprocal => slightly looser tolerance than the pure-f32 version).
    ref = reference_forward(obs, params)
    assert out.shape == (batch, action_dim)
    assert jnp.allclose(out, ref, atol=1e-2, rtol=1e-2), float(
        jnp.max(jnp.abs(out - ref)))
    assert jnp.allclose(jnp.sum(out, axis=-1), 1.0, atol=1e-2)

    print("KERNEL_OK")
</pallas_src>

<mosaic_0001>
module attributes {stable_mosaic.version = 11 : i64} {
  func.func @actor_kernel(%arg0: i32, %arg1: memref<8x32xf32, #tpu.memory_space<vmem>>, %arg2: memref<288x128xbf16, #tpu.memory_space<vmem>>, %arg3: memref<8x128xf32, #tpu.memory_space<vmem>>, %arg4: memref<8x128xf32, #tpu.memory_space<vmem>>) attributes {dimension_semantics = [#tpu.dimension_semantics<parallel>], iteration_bounds = array<i64: 1>, scalar_prefetch = 0 : i64, scratch_operands = 0 : i64, tpu.core_type = #tpu.core_type<tc>, window_params = [{transform_indices = @transform_0, window_bounds = array<i64: 8, 32>}, {pipeline_mode = #tpu.pipeline_mode<synchronous>, transform_indices = @transform_1, window_bounds = array<i64: 288, 128>}, {pipeline_mode = #tpu.pipeline_mode<synchronous>, transform_indices = @transform_2, window_bounds = array<i64: 8, 128>}, {transform_indices = @transform_3, window_bounds = array<i64: 8, 128>}]} {
    %c0 = arith.constant 0 : index
    %c0_0 = arith.constant 0 : index
    %0 = vector.load %arg1[%c0, %c0_0] : memref<8x32xf32, #tpu.memory_space<vmem>>, vector<8x32xf32>
    %1 = arith.truncf %0 : vector<8x32xf32> to vector<8x32xbf16>
    %c0_1 = arith.constant 0 : index
    %c0_2 = arith.constant 0 : index
    %2 = vector.load %arg2[%c0_1, %c0_2] : memref<288x128xbf16, #tpu.memory_space<vmem>>, vector<32x128xbf16>
    %c32 = arith.constant 32 : index
    %c0_3 = arith.constant 0 : index
    %3 = vector.load %arg2[%c32, %c0_3] : memref<288x128xbf16, #tpu.memory_space<vmem>>, vector<128x128xbf16>
    %c160 = arith.constant 160 : index
    %c0_4 = arith.constant 0 : index
    %4 = vector.load %arg2[%c160, %c0_4] : memref<288x128xbf16, #tpu.memory_space<vmem>>, vector<128x128xbf16>
    %c0_5 = arith.constant 0 : index
    %c0_6 = arith.constant 0 : index
    %5 = vector.load %arg3[%c0_5, %c0_6] : memref<8x128xf32, #tpu.memory_space<vmem>>, vector<1x128xf32>
    %c1 = arith.constant 1 : index
    %c0_7 = arith.constant 0 : index
    %6 = vector.load %arg3[%c1, %c0_7] : memref<8x128xf32, #tpu.memory_space<vmem>>, vector<1x128xf32>
    %c2 = arith.constant 2 : index
    %c0_8 = arith.constant 0 : index
    %7 = vector.load %arg3[%c2, %c0_8] : memref<8x128xf32, #tpu.memory_space<vmem>>, vector<1x128xf32>
    %cst = arith.constant dense<0.000000e+00> : vector<8x128xf32>
    %8 = tpu.matmul %1, %2, %cst {dimension_numbers = #tpu.dot_dimension_numbers<[1], [0], [0], [1], [0, 0, 1, 1], [], []>} : vector<8x32xbf16>, vector<32x128xbf16>, vector<8x128xf32> -> vector<8x128xf32>
    %9 = vector.broadcast %5 : vector<1x128xf32> to vector<8x128xf32>
    %10 = arith.addf %8, %9 : vector<8x128xf32>
    %cst_9 = arith.constant 0.000000e+00 : f32
    %11 = vector.broadcast %cst_9 : f32 to vector<8x128xf32>
    %12 = arith.maximumf %10, %11 : vector<8x128xf32>
    %13 = arith.truncf %12 : vector<8x128xf32> to vector<8x128xbf16>
    %cst_10 = arith.constant dense<0.000000e+00> : vector<8x128xf32>
    %14 = tpu.matmul %13, %3, %cst_10 {dimension_numbers = #tpu.dot_dimension_numbers<[1], [0], [0], [1], [0, 0, 1, 1], [], []>} : vector<8x128xbf16>, vector<128x128xbf16>, vector<8x128xf32> -> vector<8x128xf32>
    %15 = vector.broadcast %6 : vector<1x128xf32> to vector<8x128xf32>
    %16 = arith.addf %14, %15 : vector<8x128xf32>
    %cst_11 = arith.constant 0.000000e+00 : f32
    %17 = vector.broadcast %cst_11 : f32 to vector<8x128xf32>
    %18 = arith.maximumf %16, %17 : vector<8x128xf32>
    %19 = arith.truncf %18 : vector<8x128xf32> to vector<8x128xbf16>
    %cst_12 = arith.constant dense<0.000000e+00> : vector<8x128xf32>
    %20 = tpu.matmul %19, %4, %cst_12 {dimension_numbers = #tpu.dot_dimension_numbers<[1], [0], [0], [1], [0, 0, 1, 1], [], []>} : vector<8x128xbf16>, vector<128x128xbf16>, vector<8x128xf32> -> vector<8x128xf32>
    %21 = vector.broadcast %7 : vector<1x128xf32> to vector<8x128xf32>
    %22 = arith.addf %20, %21 : vector<8x128xf32>
    %23 = tpu.iota {dimensions = array<i32: 1>} : vector<8x128xi32>
    %c8_i32 = arith.constant 8 : i32
    %24 = vector.broadcast %c8_i32 : i32 to vector<8x128xi32>
    %25 = arith.cmpi slt, %23, %24 : vector<8x128xi32>
    %cst_13 = arith.constant -1.000000e+30 : f32
    %26 = vector.broadcast %cst_13 : f32 to vector<8x128xf32>
    %27 = arith.select %25, %22, %26 : vector<8x128xi1>, vector<8x128xf32>
    %cst_14 = arith.constant dense<0xFF800000> : vector<8xf32>
    %28 = vector.multi_reduction <maximumf>, %27, %cst_14 [1] : vector<8x128xf32> to vector<8xf32>
    %29 = vector.shape_cast %28 : vector<8xf32> to vector<8x1xf32>
    %30 = vector.broadcast %29 : vector<8x1xf32> to vector<8x128xf32>
    %31 = arith.subf %27, %30 : vector<8x128xf32>
    %32 = math.exp %31 : vector<8x128xf32>
    %cst_15 = arith.constant dense<0.000000e+00> : vector<8xf32>
    %33 = vector.multi_reduction <add>, %32, %cst_15 [1] : vector<8x128xf32> to vector<8xf32>
    %34 = vector.shape_cast %33 : vector<8xf32> to vector<8x1xf32>
    %35 = tpu.reciprocal %34 {approx = true} : vector<8x1xf32> -> vector<8x1xf32>
    %36 = vector.broadcast %35 : vector<8x1xf32> to vector<8x128xf32>
    %37 = arith.mulf %32, %36 : vector<8x128xf32>
    %c0_16 = arith.constant 0 : index
    %c0_17 = arith.constant 0 : index
    %38 = vector.load %arg4[%c0_16, %c0_17] : memref<8x128xf32, #tpu.memory_space<vmem>>, vector<8x128xf32>
    tpu.vector_store %arg4[%c0_16, %c0_17], %37 {strides = array<i32>} : memref<8x128xf32, #tpu.memory_space<vmem>>, vector<8x128xf32>,
    return
  }
  func.func @transform_0(%arg0: i32) -> (i32, i32) {
    %c0_i32 = arith.constant 0 : i32
    %c0_i32_0 = arith.constant 0 : i32
    return %arg0, %c0_i32 : i32, i32
  }
  func.func @transform_1(%arg0: i32) -> (i32, i32) {
    %c0_i32 = arith.constant 0 : i32
    %c0_i32_0 = arith.constant 0 : i32
    %c0_i32_1 = arith.constant 0 : i32
    return %c0_i32, %c0_i32_0 : i32, i32
  }
  func.func @transform_2(%arg0: i32) -> (i32, i32) {
    %c0_i32 = arith.constant 0 : i32
    %c0_i32_0 = arith.constant 0 : i32
    %c0_i32_1 = arith.constant 0 : i32
    return %c0_i32, %c0_i32_0 : i32, i32
  }
  func.func @transform_3(%arg0: i32) -> (i32, i32) {
    %c0_i32 = arith.constant 0 : i32
    %c0_i32_0 = arith.constant 0 : i32
    return %arg0, %c0_i32 : i32, i32
  }
}

</mosaic_0001>

<bundles_post_ra>
// kernel: tpu_custom_call.1
= control target key start
LH: loop header
LB: loop body
LE: loop exit
PB: predicated region body
PF: predicated region fallthrough
CT: control target
= control target key end

     0   :  { %8 = vsyncpa [#allocation3], 0  ;;  %s687_s0 = inlined_call_operand.hbm [shape: f32[8,32], index: 0, kind: input, shape index: {}]   ;;  %s688_s1 = inlined_call_operand.hbm [shape: bf16[288,128], index: 1, kind: input, shape index: {}]   ;;  %s689_s2 = inlined_call_operand.hbm [shape: f32[8,128], index: 2, kind: input, shape index: {}]   ;;  %s690_s3 = inlined_call_operand.hbm [shape: f32[8,128], index: 3, kind: output, shape index: {}]  }
   0x1   :  { %9 = vsyncpa [#allocation6], 0 }
   0x2   :  { %10 = vsyncpa [#allocation4], 0  ;;  %s587_s12 = smov [#allocation5]   ;;  %s493_s16 = scalar_lea.hbm %s688_s1, 2304 }
   0x3   :  { %s26_s13 = sshll.u32 %s587_s12, 4  ;;  %p494_p0 = scmp.ne.s32.totalorder %s688_s1, %s493_s16  ;;  %s27_s13 = int_to_ptr.vmem [resolvable:$true] %s26_s13 }
   0x4   :  { %p497_p1 = scmp.lt.u32.totalorder %s493_s16, %s688_s1 }
   0x6   :  { %p499_p2 = pnand %p497_p1, %p494_p0 }
   0x8   :  { %502 = shalt.err (!%p499_p2)
}
   0x9   :  { %s503_s21 = scalar_lea.vmem %s27_s13, 2304  ;;  %p508_p4 = scmp.lt.s32.totalorder %s27_s13, %s27_s13 }
   0xa   :  { %p504_p3 = scmp.ne.s32.totalorder %s27_s13, %s503_s21  ;;  %p509_p5 = scmp.lt.s32.totalorder %s503_s21, %s503_s21 }
   0xc   :  { %p510_p6 = por %p509_p5, %p508_p4 }
   0xe   :  { %p511_p7 = pnand %p510_p6, %p504_p3 }
  0x10   :  { %514 = shalt.err (!%p511_p7)
}
  0x11   :  { %s588_s22 = smov 64   ;;  %s589_s23 = smov 4  }
  0x12   :  { %32 = dma.hbm_to_vmem [thread:$0]  %s688_s1, 2304, %s27_s13, [#allocation6], %s588_s22, %s588_s22, %s589_s23  }
  0x13   :  { %s590_s26 = smov [#allocation2]   ;;  %s591_s28 = smov [#allocation7]  }
  0x14   :  { %s17_s27 = sshll.u32 %s590_s26, 4  ;;  %s39_s29 = sshll.u32 %s591_s28, 4  ;;  %s18_s27 = int_to_ptr.vmem [resolvable:$true] %s17_s27  ;;  %s40_s29 = int_to_ptr.vmem [resolvable:$true] %s39_s29 }
  0x15   :  { %s515_s5 = scalar_lea.hbm %s687_s0, 128 }
  0x16   :  { %p516_p8 = scmp.ne.s32.totalorder %s687_s0, %s515_s5  ;;  %p519_p9 = scmp.lt.u32.totalorder %s515_s5, %s687_s0 }
  0x18   :  { %p521_p10 = pnand %p519_p9, %p516_p8 }
  0x1a   :  { %524 = shalt.err (!%p521_p10)
}
  0x1b   :  { %s525_s1 = scalar_lea.vmem %s18_s27, 128  ;;  %p530_p12 = scmp.lt.s32.totalorder %s18_s27, %s18_s27 }
  0x1c   :  { %p526_p11 = scmp.ne.s32.totalorder %s18_s27, %s525_s1  ;;  %p531_p13 = scmp.lt.s32.totalorder %s525_s1, %s525_s1 }
  0x1e   :  { %p532_p0 = por %p531_p13, %p530_p12 }
  0x20   :  { %p533_p1 = pnand %p532_p0, %p526_p11 }
  0x22   :  { %536 = shalt.err (!%p533_p1)
}
  0x23   :  { %20 = dma.hbm_to_vmem [thread:$0]  %s687_s0, 128, %s18_s27, [#allocation3]  }
  0x24   :  { %s537_s14 = scalar_lea.hbm %s689_s2, 128 }
  0x25   :  { %p538_p2 = scmp.ne.s32.totalorder %s689_s2, %s537_s14  ;;  %p541_p3 = scmp.lt.u32.totalorder %s537_s14, %s689_s2 }
  0x27   :  { %p543_p4 = pnand %p541_p3, %p538_p2 }
  0x29   :  { %546 = shalt.err (!%p543_p4)
}
  0x2a   :  { %s547_s19 = scalar_lea.vmem %s40_s29, 128  ;;  %p552_p6 = scmp.lt.s32.totalorder %s40_s29, %s40_s29 }
  0x2b   :  { %p548_p5 = scmp.ne.s32.totalorder %s40_s29, %s547_s19  ;;  %p553_p7 = scmp.lt.s32.totalorder %s547_s19, %s547_s19 }
  0x2d   :  { %p554_p8 = por %p553_p7, %p552_p6 }
  0x2f   :  { %p555_p9 = pnand %p554_p8, %p548_p5 }
  0x31   :  { %558 = shalt.err (!%p555_p9)
}
  0x32   :  { %42 = dma.hbm_to_vmem [thread:$0]  %s689_s2, 128, %s40_s29, [#allocation6]  }
  0x33   :  { %581 = dma.done.wait [#allocation3], 128  }
  0x34   :  { %582 = vsyncadd [#allocation3], 4294967168 }
  0x35   :  { %583 = dma.done.wait [#allocation6], 2432  }
  0x36   :  { %584 = vsyncadd [#allocation6], 4294964864  ;;  %v592_v0 = vmov 0.0   ;;  %vm593_vm0 = vmmov 0   ;;  %v471_v1 = vld [vmem:[#allocation5] sm:$0xff]   ;;  %v472_v2 = vld [vmem:[#allocation5 + $0x8] sm:$0xff]   ;;  %v342_v37 = vlaneseq }
  0x37   :  { %415 = vmatprep.subr.bf16.mxu0 %v592_v0  ;;  %419 = vmatprep.mubr.msk.bf16.mxu0 %vm593_vm0, %v592_v0  ;;  %v53_v3 = vld [vmem:[#allocation2] sm:$0xff]  ;;  %v473_v4 = vld [vmem:[#allocation5 + $0x10] sm:$0xff]   ;;  %vm110_vm1 = vcmask 261120   ;;  %v475_v7 = vld [vmem:[#allocation5 + $0x20] sm:$0xff]   ;;  %s594_s2 = smov [#allocation8]  }
  0x38   :  { %423 = vmatprep.subr.bf16.mxu1 %v592_v0  ;;  %439 = vmatprep.mubr.msk.bf16.mxu1 %vm593_vm0, %v592_v0  ;;  %v54_v5 = vpack.c.bf16 %v53_v3, %v53_v3  ;;  %v474_v6 = vld [vmem:[#allocation5 + $0x18] sm:$0xff]   ;;  %v476_v8 = vld [vmem:[#allocation5 + $0x28] sm:$0xff]   ;;  %v477_v9 = vld [vmem:[#allocation5 + $0x30] sm:$0xff]   ;;  %v343_v38 = vand.u32 127, %v342_v37  ;;  %s362_s21 = sshll.u32 %s594_s2, 4  ;;  %s363_s21 = int_to_ptr.vmem [resolvable:$true] %s362_s21 }
  0x39   :  { %416 = vmatpush3.bf16.msra.mxu0 %v471_v1  ;;  %424 = vmatpush3.bf16.msra.mxu1 %v473_v4  ;;  %v478_v10 = vld [vmem:[#allocation5 + $0x38] sm:$0xff]   ;;  %v479_v11 = vld [vmem:[#allocation5 + $0x40] sm:$0xff]   ;;  %v480_v12 = vld [vmem:[#allocation5 + $0x48] sm:$0xff]   ;;  %s559_s22 = scalar_lea.vmem %s363_s21, 128  ;;  %p564_p11 = scmp.lt.s32.totalorder %s363_s21, %s363_s21 }
  0x3a   :  { %417 = vmatprep.subr.bf16.mxu0 %v592_v0  ;;  %425 = vmatprep.subr.bf16.mxu1 %v592_v0  ;;  %v481_v13 = vld [vmem:[#allocation5 + $0x50] sm:$0xff]   ;;  %v482_v14 = vld [vmem:[#allocation5 + $0x58] sm:$0xff]   ;;  %v483_v15 = vld [vmem:[#allocation5 + $0x60] sm:$0xff]   ;;  %vm344_vm2 = vcmp.lt.s32.totalorder %v343_v38, 8  ;;  %p560_p10 = scmp.ne.s32.totalorder %s363_s21, %s559_s22  ;;  %p565_p12 = scmp.lt.s32.totalorder %s559_s22, %s559_s22 }
  0x3b   :  { %v484_v16 = vld [vmem:[#allocation5 + $0x68] sm:$0xff]   ;;  %v485_v17 = vld [vmem:[#allocation5 + $0x70] sm:$0xff]   ;;  %v486_v18 = vld [vmem:[#allocation5 + $0x78] sm:$0xff]  }
  0x3c   :  { %v372_v19 = vld [vmem:[#allocation7] ss:$0 sm:$0xff]  ;;  %v487_v27 = vld [vmem:[#allocation5 + $0x80] sm:$0xff]   ;;  %v488_v28 = vld [vmem:[#allocation5 + $0x88] sm:$0xff]   ;;  %p566_p13 = por %p565_p12, %p564_p11 }
  0x3d   :  { %418 = vmatpush3.bf16.msra.mxu0 %v472_v2  ;;  %426 = vmatpush3.bf16.msra.mxu1 %v474_v6  ;;  %v376_v29 = vld [vmem:[#allocation7 + $0x1] ss:$0 sm:$0xff]  ;;  %v385_v39 = vld [vmem:[#allocation7 + $0x2] ss:$0 sm:$0xff] }
  0x3e   :  { %443 = vmatprep.subr.bf16.mxu0 %v592_v0  ;;  %427 = vmatprep.subr.bf16.mxu1 %v592_v0  ;;  %p567_p0 = pnand %p566_p13, %p560_p10 }
  0x40   :  { %420 = vmatmul.mubr.msk.bf16.vlgmr.msra.gmra.mrb[0].mxu0 %vm110_vm1, %v54_v5 }
  0x41   :  { %459 = vmatprep.mubr.msk.bf16.mxu0 %vm593_vm0, %v592_v0  ;;  %428 = vmatpush3.bf16.msra.mxu1 %v475_v7 }
  0x42   :  { %429 = vmatprep.subr.bf16.mxu1 %v592_v0  ;;  %444 = vmatpush3.bf16.msra.mxu0 %v481_v13 }
  0x43   :  { %445 = vmatprep.subr.bf16.mxu0 %v592_v0 }
  0x45   :  { %430 = vmatpush3.bf16.msra.mxu1 %v476_v8 }
  0x46   :  { %431 = vmatprep.subr.bf16.mxu1 %v592_v0  ;;  %446 = vmatpush3.bf16.msra.mxu0 %v482_v14 }
  0x47   :  { %447 = vmatprep.subr.bf16.mxu0 %v592_v0 }
  0x49   :  { %432 = vmatpush3.bf16.msra.mxu1 %v477_v9 }
  0x4a   :  { %433 = vmatprep.subr.bf16.mxu1 %v592_v0  ;;  %448 = vmatpush3.bf16.msra.mxu0 %v483_v15 }
  0x4b   :  { %449 = vmatprep.subr.bf16.mxu0 %v592_v0 }
  0x4d   :  { %434 = vmatpush3.bf16.msra.mxu1 %v478_v10 }
  0x4e   :  { %435 = vmatprep.subr.bf16.mxu1 %v592_v0  ;;  %450 = vmatpush3.bf16.msra.mxu0 %v484_v16 }
  0x4f   :  { %451 = vmatprep.subr.bf16.mxu0 %v592_v0 }
  0x51   :  { %436 = vmatpush3.bf16.msra.mxu1 %v479_v11 }
  0x52   :  { %437 = vmatprep.subr.bf16.mxu1 %v592_v0  ;;  %452 = vmatpush3.bf16.msra.mxu0 %v485_v17 }
  0x53   :  { %453 = vmatprep.subr.bf16.mxu0 %v592_v0 }
  0x55   :  { %438 = vmatpush3.bf16.msra.mxu1 %v480_v12 }
  0x56   :  { %454 = vmatpush3.bf16.msra.mxu0 %v486_v18 }
  0x57   :  { %455 = vmatprep.subr.bf16.mxu0 %v592_v0 }
  0x5a   :  { %456 = vmatpush3.bf16.msra.mxu0 %v487_v27 }
  0x5b   :  { %457 = vmatprep.subr.bf16.mxu0 %v592_v0 }
  0x5e   :  { %458 = vmatpush3.bf16.msra.mxu0 %v488_v28 }
 0x113   :  { %v148_v20 = vpop.f32.mrb[0].mxu0 }
 0x114   :  { %v149_v21 = vadd.f32 %v372_v19, %v148_v20  ;;  %v421_v22 = vpop.f32.mrb[1].mxu0 }
 0x115   :  { %v151_v23 = vpop.f32.mrb[2].mxu0 }
 0x116   :  { %v154_v24 = vmax.f32 %v149_v21, 0.0  ;;  %v422_v25 = vpop.f32.mrb[3].mxu0 }
 0x118   :  { %v155_v26 = vpack.c.bf16 %v154_v24, %v154_v24 }
 0x11a   :  { %440 = vmatmul.mubr.bf16.vlgmr.msra.gmra.mrb[0].mxu1 %v155_v26 }
 0x1ed   :  { %v242_v30 = vpop.f32.mrb[0].mxu1 }
 0x1ee   :  { %v243_v31 = vadd.f32 %v376_v29, %v242_v30  ;;  %v441_v32 = vpop.f32.mrb[1].mxu1 }
 0x1ef   :  { %v245_v33 = vpop.f32.mrb[2].mxu1 }
 0x1f0   :  { %v248_v34 = vmax.f32 %v243_v31, 0.0  ;;  %v442_v35 = vpop.f32.mrb[3].mxu1 }
 0x1f2   :  { %v249_v36 = vpack.c.bf16 %v248_v34, %v248_v34 }
 0x1f4   :  { %460 = vmatmul.mubr.bf16.vlgmr.msra.gmra.mrb[4].mxu0 %v249_v36 }
 0x2c7   :  { %v336_v40 = vpop.f32.mrb[4].mxu0 }
 0x2c8   :  { %v337_v41 = vadd.f32 %v385_v39, %v336_v40  ;;  %v461_v42 = vpop.f32.mrb[5].mxu0 }
 0x2c9   :  { %v339_v43 = vpop.f32.mrb[6].mxu0 }
 0x2ca   :  { %v462_v44 = vpop.f32.mrb[7].mxu0  ;;  %v345_v45 = vsel %vm344_vm2, %v337_v41, -1e+30 }
 0x2cb   :  { %346 = vmax.xlane.f32.xlu0 %v345_v45 }
 0x358   :  { %v347_v46 = vpop.xlane.xlu0 %346 }
 0x359   :  { %v348_v47 = vsub.f32 %v345_v45, %v347_v46 }
 0x35b   :  { %v349_v48 = vmul.f32 1.442695, %v348_v47 }
 0x35d   :  { %489 = vpow2.f32 %v349_v48 }
 0x367   :  { %v490_v49 = vpop.eup %489 }
 0x368   :  { %351 = vadd.xlane.f32.xlu0 %v490_v49 }
 0x3f5   :  { %v352_v50 = vpop.xlane.xlu0 %351 }
 0x3f6   :  { %491 = vrcp.f32 %v352_v50 }
 0x400   :  { %v492_v51 = vpop.eup %491 }
 0x401   :  { %v354_v52 = vmul.f32 %v492_v51, %v490_v49 }
 0x403   :  { %355 = vst [vmem:[#allocation8] sm:$0xff] %v354_v52 }
 0x404   :  { %570 = shalt.err (!%p567_p0)
}
 0x405   :  { %s571_s25 = scalar_lea.hbm %s690_s3, 128 }
 0x406   :  { %p572_p1 = scmp.ne.s32.totalorder %s690_s3, %s571_s25  ;;  %p575_p2 = scmp.lt.u32.totalorder %s571_s25, %s690_s3 }
 0x408   :  { %p577_p3 = pnand %p575_p2, %p572_p1 }
 0x40a   :  { %580 = shalt.err (!%p577_p3)
}
 0x40b   :  { %365 = dma.vmem_to_hbm [thread:$0]  %s363_s21, 128, %s690_s3, [#allocation4]  }
 0x40c   :  { %585 = dma.done.wait [#allocation4], 128  }
 0x40d   :  { %586 = vsyncadd [#allocation4], 4294967168 }
 0x40e   :  { %369 = vsyncpa [#allocation3], 1 }
 0x40f   :  { %370 = vsyncpa [#allocation6], 1 }
 0x410   :  { %371 = vsyncpa [#allocation4], 1 }

</bundles_post_ra>
